<compile_context>
chip_gen: v6e
topology: v6e:2x2x1
jax: 0.10.0
libtpu: 0.0.40
codegen_flags: <defaults>
</compile_context>

<pallas_src>
import jax
import jax.numpy as jnp
from jax.experimental import pallas as pl
from jax.experimental.pallas import tpu as pltpu


def _round_up(x, m):
    return (x + m - 1) // m * m


def fake_news_mlp_kernel(img_ref, txt_ref, w1i_ref, w1t_ref, b1_ref, w2_ref,
                         b2_ref, out_ref):
    """Fused split-Linear + ReLU + (Dropout==id) + Linear for one batch tile.

    img_ref : (TILE_B, D1)   caller dtype (f32/bf16); cast to bf16 in-body
    txt_ref : (TILE_B, D2)   caller dtype
    w1i_ref : (D1, Hp) bf16  rows of W1 multiplying the image embedding
    w1t_ref : (D2, Hp) bf16  rows of W1 multiplying the text embedding
    b1_ref  : (1, Hp)  f32   first-layer bias (hidden zero-padded to Hp lanes)
    w2_ref  : (1, Hp)  f32   second-layer weight as a row (zero-padded)
    b2_ref  : (1,)     f32   second-layer bias (SMEM scalar)
    out_ref : (1, TILE_B) f32  lane-dense logits row for this tile
    """
    img = img_ref[...].astype(jnp.bfloat16)
    txt = txt_ref[...].astype(jnp.bfloat16)

    # torch.cat + Linear == dot(img, W1[:D1]) + dot(txt, W1[D1:]); two MXU pushes
    # with f32 accumulation, no (TILE_B, D1+D2) concat copy in VMEM per step.
    h = jnp.dot(img, w1i_ref[...], preferred_element_type=jnp.float32)
    h = h + jnp.dot(txt, w1t_ref[...], preferred_element_type=jnp.float32)
    h = jnp.maximum(h + b1_ref[...], 0.0)                 # bias + ReLU (VPU)

    # Dropout(0.3): identity at inference time -> no-op.
    # Second layer has N=1: VPU multiply + XLU lane reduction instead of a
    # wasted MXU push.
    y = jnp.sum(h * w2_ref[...], axis=-1, keepdims=True) + b2_ref[0]   # (TILE_B, 1)

    # One small relayout to a lane-dense (1, TILE_B) row -> unmasked vector stores.
    out_ref[...] = y.reshape(1, -1).astype(out_ref.dtype)


def fake_news_classifier(image_embed, text_embed, params, *, tile_b=512):
    """Pallas forward pass.  Batch is tiled over a 1-D parallel grid; weights stay
    resident in VMEM; embedding tiles are double-buffered by the BlockSpec
    pipeline.  The workload is HBM-bandwidth bound at realistic sizes, so the
    wrapper does no extra passes over the embeddings."""
    w1, b1, w2, b2 = params["w1"], params["b1"], params["w2"], params["b2"]
    B, d1 = image_embed.shape
    b2_, d2 = text_embed.shape
    assert B == b2_
    d = d1 + d2
    H = w1.shape[1]
    assert w1.shape == (d, H)

    # ---- parameter prep (tiny, one-time; negligible vs. the batched matmul) ---
    # Pad hidden dim to a full 128-lane multiple: zero W1 columns / zero b1
    # entries give ReLU(0)=0 and zero w2 entries ignore them -> exactly equivalent.
    hp = max(_round_up(H, 128), 128)
    w1p = jnp.pad(w1, ((0, 0), (0, hp - H))).astype(jnp.bfloat16)
    w1i = w1p[:d1]                                                     # (D1, Hp)
    w1t = w1p[d1:]                                                     # (D2, Hp)
    b1p = jnp.pad(b1, (0, hp - H)).reshape(1, hp).astype(jnp.float32)  # (1, Hp)
    w2p = jnp.pad(w2[:, 0], (0, hp - H)).reshape(1, hp).astype(jnp.float32)
    b2p = b2.reshape(1).astype(jnp.float32)                            # SMEM scalar

    # Ragged batch grid (no padding pass over the embeddings).  Garbage rows in
    # the last partial tile are row-independent and sliced off below.
    tile_b = max(128, int(tile_b))
    num_tiles = pl.cdiv(B, tile_b)
    bp = num_tiles * tile_b

    flops = 2 * B * d * H + 2 * B * H
    bytes_accessed = (B * d * image_embed.dtype.itemsize   # embeddings (read once)
                      + d * hp * 2 + (2 * hp + 1) * 4      # weights / biases
                      + B * 4)                              # logits

    out = pl.pallas_call(
        fake_news_mlp_kernel,
        out_shape=jax.ShapeDtypeStruct((1, bp), jnp.float32),
        grid=(num_tiles,),
        in_specs=[
            pl.BlockSpec((tile_b, d1), lambda i: (i, 0)),        # img tile (pipelined)
            pl.BlockSpec((tile_b, d2), lambda i: (i, 0)),        # txt tile (pipelined)
            pl.BlockSpec((d1, hp), lambda i: (0, 0)),            # W1[:D1]  (resident)
            pl.BlockSpec((d2, hp), lambda i: (0, 0)),            # W1[D1:]  (resident)
            pl.BlockSpec((1, hp), lambda i: (0, 0)),             # b1       (resident)
            pl.BlockSpec((1, hp), lambda i: (0, 0)),             # w2 row   (resident)
            pl.BlockSpec(memory_space=pltpu.MemorySpace.SMEM),   # b2 scalar
        ],
        # Lane-dense output row: each grid step writes a distinct 128*k-lane slab.
        out_specs=pl.BlockSpec((1, tile_b), lambda i: (0, i)),
        compiler_params=pltpu.CompilerParams(
            # Independent batch tiles: shard across the 2 TCs on v7x; no-op on
            # single-TC v5e/v6e.
            dimension_semantics=("parallel",),
            # Safe across v5e (16 MiB default scoped) .. v7x (64 MiB physical).
            vmem_limit_bytes=32 * 1024 * 1024,
        ),
        cost_estimate=pl.CostEstimate(
            flops=flops, transcendentals=0, bytes_accessed=bytes_accessed),
    )(image_embed, text_embed, w1i, w1t, b1p, w2p, b2p)

    # (1, bp) lane-dense row -> (B, 1) logits (cheap; only 4 B per row).
    return out.reshape(bp, 1)[:B]


def init_params(key, image_dim, text_dim, hidden_dim):
    """Deterministic parameter init mirroring nn.Linear's uniform(-1/sqrt(fan_in))."""
    k1, k2, k3, k4 = jax.random.split(key, 4)
    in_dim = image_dim + text_dim
    lim1 = 1.0 / jnp.sqrt(in_dim)
    lim2 = 1.0 / jnp.sqrt(hidden_dim)
    return {
        "w1": jax.random.uniform(k1, (in_dim, hidden_dim), jnp.float32, -lim1, lim1),
        "b1": jax.random.uniform(k2, (hidden_dim,), jnp.float32, -lim1, lim1),
        "w2": jax.random.uniform(k3, (hidden_dim, 1), jnp.float32, -lim2, lim2),
        "b2": jax.random.uniform(k4, (1,), jnp.float32, -lim2, lim2),
    }


if __name__ == "__main__":
    # Small shapes consistent with the module (defaults 512/768/256 scaled down).
    # B=200 with tile_b=128 exercises a 2-step grid with a ragged last tile;
    # H=64 exercises the hidden-dim lane padding.
    B, IMAGE_DIM, TEXT_DIM, HIDDEN_DIM = 200, 128, 128, 64

    key = jax.random.PRNGKey(0)
    k_img, k_txt, k_params = jax.random.split(key, 3)
    image_embed = jax.random.normal(k_img, (B, IMAGE_DIM), jnp.float32)
    text_embed = jax.random.normal(k_txt, (B, TEXT_DIM), jnp.float32)
    params = init_params(k_params, IMAGE_DIM, TEXT_DIM, HIDDEN_DIM)

    out = fake_news_classifier(image_embed, text_embed, params, tile_b=128)
    out = jax.block_until_ready(out)

    # Pure-JAX reference (concat + MLP, dropout == identity at inference).
    # Mirrors the kernel's mixed precision: bf16 matmul inputs, f32 accumulation.
    x = jnp.concatenate([image_embed, text_embed], axis=1)
    h = jnp.dot(x.astype(jnp.bfloat16), params["w1"].astype(jnp.bfloat16),
                preferred_element_type=jnp.float32) + params["b1"]
    h = jnp.maximum(h, 0.0)
    ref = jnp.dot(h, params["w2"], precision=jax.lax.Precision.HIGHEST) + params["b2"]

    assert out.shape == (B, 1)
    err = float(jnp.max(jnp.abs(out - ref)))
    assert jnp.allclose(out, ref, atol=2e-3, rtol=2e-3), err
    print("KERNEL_OK")
</pallas_src>

<mosaic_0001>
module attributes {stable_mosaic.version = 11 : i64} {
  func.func @fake_news_mlp_kernel(%arg0: i32, %arg1: memref<128x128xf32, #tpu.memory_space<vmem>>, %arg2: memref<128x128xf32, #tpu.memory_space<vmem>>, %arg3: memref<128x128xbf16, #tpu.memory_space<vmem>>, %arg4: memref<128x128xbf16, #tpu.memory_space<vmem>>, %arg5: memref<1x128xf32, #tpu.memory_space<vmem>>, %arg6: memref<1x128xf32, #tpu.memory_space<vmem>>, %arg7: memref<1xf32, #tpu.memory_space<smem>>, %arg8: memref<1x128xf32, #tpu.memory_space<vmem>>) attributes {dimension_semantics = [#tpu.dimension_semantics<parallel>], iteration_bounds = array<i64: 2>, scalar_prefetch = 0 : i64, scratch_operands = 0 : i64, tpu.core_type = #tpu.core_type<tc>, window_params = [{transform_indices = @transform_0, window_bounds = array<i64: 128, 128>}, {transform_indices = @transform_1, window_bounds = array<i64: 128, 128>}, {pipeline_mode = #tpu.pipeline_mode<synchronous>, transform_indices = @transform_2, window_bounds = array<i64: 128, 128>}, {pipeline_mode = #tpu.pipeline_mode<synchronous>, transform_indices = @transform_3, window_bounds = array<i64: 128, 128>}, {pipeline_mode = #tpu.pipeline_mode<synchronous>, transform_indices = @transform_4, window_bounds = array<i64: 1, 128>}, {pipeline_mode = #tpu.pipeline_mode<synchronous>, transform_indices = @transform_5, window_bounds = array<i64: 1, 128>}, {transform_indices = @transform_6, window_bounds = array<i64: 1>}, {transform_indices = @transform_7, window_bounds = array<i64: 1, 128>}]} {
    %c0 = arith.constant 0 : index
    %c0_0 = arith.constant 0 : index
    %0 = vector.load %arg1[%c0, %c0_0] : memref<128x128xf32, #tpu.memory_space<vmem>>, vector<128x128xf32>
    %1 = arith.truncf %0 : vector<128x128xf32> to vector<128x128xbf16>
    %c0_1 = arith.constant 0 : index
    %c0_2 = arith.constant 0 : index
    %2 = vector.load %arg2[%c0_1, %c0_2] : memref<128x128xf32, #tpu.memory_space<vmem>>, vector<128x128xf32>
    %3 = arith.truncf %2 : vector<128x128xf32> to vector<128x128xbf16>
    %c0_3 = arith.constant 0 : index
    %c0_4 = arith.constant 0 : index
    %4 = vector.load %arg3[%c0_3, %c0_4] : memref<128x128xbf16, #tpu.memory_space<vmem>>, vector<128x128xbf16>
    %cst = arith.constant dense<0.000000e+00> : vector<128x128xf32>
    %5 = tpu.matmul %1, %4, %cst {dimension_numbers = #tpu.dot_dimension_numbers<[1], [0], [0], [1], [0, 0, 1, 1], [], []>} : vector<128x128xbf16>, vector<128x128xbf16>, vector<128x128xf32> -> vector<128x128xf32>
    %c0_5 = arith.constant 0 : index
    %c0_6 = arith.constant 0 : index
    %6 = vector.load %arg4[%c0_5, %c0_6] : memref<128x128xbf16, #tpu.memory_space<vmem>>, vector<128x128xbf16>
    %cst_7 = arith.constant dense<0.000000e+00> : vector<128x128xf32>
    %7 = tpu.matmul %3, %6, %cst_7 {dimension_numbers = #tpu.dot_dimension_numbers<[1], [0], [0], [1], [0, 0, 1, 1], [], []>} : vector<128x128xbf16>, vector<128x128xbf16>, vector<128x128xf32> -> vector<128x128xf32>
    %8 = arith.addf %5, %7 : vector<128x128xf32>
    %c0_8 = arith.constant 0 : index
    %c0_9 = arith.constant 0 : index
    %9 = vector.load %arg5[%c0_8, %c0_9] : memref<1x128xf32, #tpu.memory_space<vmem>>, vector<1x128xf32>
    %10 = vector.broadcast %9 : vector<1x128xf32> to vector<128x128xf32>
    %11 = arith.addf %8, %10 : vector<128x128xf32>
    %cst_10 = arith.constant 0.000000e+00 : f32
    %12 = vector.broadcast %cst_10 : f32 to vector<128x128xf32>
    %13 = arith.maximumf %11, %12 : vector<128x128xf32>
    %c0_11 = arith.constant 0 : index
    %c0_12 = arith.constant 0 : index
    %14 = vector.load %arg6[%c0_11, %c0_12] : memref<1x128xf32, #tpu.memory_space<vmem>>, vector<1x128xf32>
    %15 = vector.broadcast %14 : vector<1x128xf32> to vector<128x128xf32>
    %16 = arith.mulf %13, %15 : vector<128x128xf32>
    %cst_13 = arith.constant dense<0.000000e+00> : vector<128xf32>
    %17 = vector.multi_reduction <add>, %16, %cst_13 [1] : vector<128x128xf32> to vector<128xf32>
    %18 = vector.shape_cast %17 : vector<128xf32> to vector<128x1xf32>
    %c0_14 = arith.constant 0 : index
    %19 = memref.load %arg7[%c0_14] : memref<1xf32, #tpu.memory_space<smem>>
    %20 = vector.broadcast %19 : f32 to vector<128x1xf32>
    %21 = arith.addf %18, %20 : vector<128x1xf32>
    %22 = vector.shape_cast %21 : vector<128x1xf32> to vector<1x128xf32>
    %c0_15 = arith.constant 0 : index
    %c0_16 = arith.constant 0 : index
    %23 = vector.load %arg8[%c0_15, %c0_16] : memref<1x128xf32, #tpu.memory_space<vmem>>, vector<1x128xf32>
    tpu.vector_store %arg8[%c0_15, %c0_16], %22 {strides = array<i32>} : memref<1x128xf32, #tpu.memory_space<vmem>>, vector<1x128xf32>,
    return
  }
  func.func @transform_0(%arg0: i32) -> (i32, i32) {
    %c0_i32 = arith.constant 0 : i32
    %c0_i32_0 = arith.constant 0 : i32
    return %arg0, %c0_i32 : i32, i32
  }
  func.func @transform_1(%arg0: i32) -> (i32, i32) {
    %c0_i32 = arith.constant 0 : i32
    %c0_i32_0 = arith.constant 0 : i32
    return %arg0, %c0_i32 : i32, i32
  }
  func.func @transform_2(%arg0: i32) -> (i32, i32) {
    %c0_i32 = arith.constant 0 : i32
    %c0_i32_0 = arith.constant 0 : i32
    %c0_i32_1 = arith.constant 0 : i32
    return %c0_i32, %c0_i32_0 : i32, i32
  }
  func.func @transform_3(%arg0: i32) -> (i32, i32) {
    %c0_i32 = arith.constant 0 : i32
    %c0_i32_0 = arith.constant 0 : i32
    %c0_i32_1 = arith.constant 0 : i32
    return %c0_i32, %c0_i32_0 : i32, i32
  }
  func.func @transform_4(%arg0: i32) -> (i32, i32) {
    %c0_i32 = arith.constant 0 : i32
    %c0_i32_0 = arith.constant 0 : i32
    %c0_i32_1 = arith.constant 0 : i32
    return %c0_i32, %c0_i32_0 : i32, i32
  }
  func.func @transform_5(%arg0: i32) -> (i32, i32) {
    %c0_i32 = arith.constant 0 : i32
    %c0_i32_0 = arith.constant 0 : i32
    %c0_i32_1 = arith.constant 0 : i32
    return %c0_i32, %c0_i32_0 : i32, i32
  }
  func.func @transform_6(%arg0: i32) -> i32 {
    %c0_i32 = arith.constant 0 : i32
    %c0_i32_0 = arith.constant 0 : i32
    return %c0_i32 : i32
  }
  func.func @transform_7(%arg0: i32) -> (i32, i32) {
    %c0_i32 = arith.constant 0 : i32
    %c0_i32_0 = arith.constant 0 : i32
    return %c0_i32, %arg0 : i32, i32
  }
}

</mosaic_0001>

<bundles_post_ra>
// kernel: tpu_custom_call.1
= control target key start
LH: loop header
LB: loop body
LE: loop exit
PB: predicated region body
PF: predicated region fallthrough
CT: control target
= control target key end

     0   :  { %s1962_s0 = inlined_call_operand.hbm [shape: f32[200,128], index: 0, kind: input, shape index: {}]   ;;  %s1963_s1 = inlined_call_operand.hbm [shape: f32[200,128], index: 1, kind: input, shape index: {}]   ;;  %s1964_s2 = inlined_call_operand.hbm [shape: bf16[128,128], index: 2, kind: input, shape index: {}]   ;;  %s1965_s3 = inlined_call_operand.hbm [shape: bf16[128,128], index: 3, kind: input, shape index: {}]   ;;  %s1966_s4 = inlined_call_operand.vmem [shape: f32[1,128], index: 4, kind: input, shape index: {}]   ;;  %s1967_s5 = inlined_call_operand.vmem [shape: f32[1,128], index: 5, kind: input, shape index: {}]   ;;  %s1968_s6 = inlined_call_operand.<no memory space> [shape: f32[1], index: 6, kind: input, shape index: {}]   ;;  %s1969_s7 = inlined_call_operand.hbm [shape: f32[1,256], index: 7, kind: output, shape index: {}]  }
   0x1   :  { %1974 = sst [smem:[#allocation17_spill]] %s1964_s2 }
   0x2   :  { %1975 = sst [smem:[#allocation18_spill]] %s1965_s3 }
   0x3   :  { %12 = sst [smem:[#allocation2]] %s1968_s6 }
   0x4   :  { %13 = vsyncpa [#allocation4], 0 }
   0x5   :  { %15 = vsyncpa [#allocation4 + $0x1], 0 }
   0x6   :  { %16 = vsyncpa [#allocation7], 0 }
   0x7   :  { %18 = vsyncpa [#allocation7 + $0x1], 0 }
   0x8   :  { %19 = vsyncpa [#allocation10], 0 }
   0x9   :  { %20 = vsyncpa [#allocation5], 0 }
   0xa   :  { %22 = vsyncpa [#allocation5 + $0x1], 0  ;;  %s1584_s26 = smov 0   ;;  %s1586_s27 = smov 0  }
   0xb   :  { %s1588_s28 = smov 0   ;;  %s1590_s29 = smov 0  }
   0xc LB: > { %s1605_s6 = sadd.s32 4294967295, %s1528_s29   ;;  %s1121_s30 = sadd.s32 4294967294, %s1528_s29   ;;  %s1528_s29 = sphi %s1590_s29, %s1995_s29   ;;  %s1524_s28 = sphi %s1588_s28, %s1994_s28   ;;  %s1520_s27 = sphi %s1586_s27, %s1993_s27   ;;  %s1516_s26 = sphi %s1584_s26, %s1992_s26  }
   0xd   : > { %s1609_s8 = sadd.s32 1, %s1528_s29   ;;  %s35_s9 = sadd.s32 1, %s1524_s28 }
   0xe   : > { %s32_s10 = ssub.s32 %s1528_s29, %s1609_s8  ;;  %p42_p0 = scmp.ne.s32.totalorder %s1524_s28, %s1520_s27 }
   0xf   : > { %p33_p1 = scmp.eq.s32.totalorder %s32_s10, 0  ;;  %p43_p2 = scmp.eq.s32.totalorder %s1528_s29, 0 }
  0x10   : > { %p48_p3 = scmp.ne.s32.totalorder %s1520_s27, %s1516_s26  ;;  %p1970_p4 = scmp.eq.s32.totalorder %s1605_s6, 0 }
  0x11   : > { %s1621_s11 = scalar_select %p33_p1, %s1524_s28, %s35_s9  }
  0x12   : > { %p1623_p5 = por %p43_p2, %p42_p0  ;;  %p1629_p6 = por %p1970_p4, %p48_p3 }
  0x13   : > { %p203_p7 = scmp.eq.s32.totalorder %s1605_s6, 1  ;;  %p209_p8 = scmp.eq.s32.totalorder %s1121_s30, 1 }
  0x14   : > { %s1977_s13 = scalar_select %p1629_p6, 1, 0 }
  0x15   : > { %p1122_p9 = scmp.ge.s32.totalorder %s1528_s29, 1  ;;  %p216_p10 = scmp.lt.s32.totalorder %s1528_s29, 3 }
  0x16   : > { %p1636_p11 = por %p203_p7, %p42_p0  ;;  %p1640_p12 = por %p209_p8, %p48_p3 }
  0x17   : > { %p1644_p13 = pnand %p1122_p9, %p216_p10  ;;  %s1530_s17 = smov [#allocation8]  }
  0x18   : > { %s1978_s14 = scalar_select %p1636_p11, 1, 0 }
  0x19   : > { %s1979_s15 = scalar_select %p1640_p12, 1, 0 }
  0x1a   : > { %p1276_p1 = pneg %p1644_p13  ;;  %s228_s18 = sshll.u32 %s1530_s17, 4  ;;  %s229_s18 = int_to_ptr.vmem [resolvable:$true] %s228_s18 }
  0x1b   : > { %s1531_s20 = smov [#allocation9]   ;;  %s1359_s22 = scalar_lea.vmem %s229_s18, 1024 }
  0x1c   : > { %p1652_p2 = pnand %p1276_p1, %p1970_p4  ;;  %s241_s21 = sshll.u32 %s1531_s20, 4  ;;  %s242_s21 = int_to_ptr.vmem [resolvable:$true] %s241_s21 }
  0x1d   : > { %p1360_p3 = scmp.ne.s32.totalorder %s229_s18, %s1359_s22  ;;  %p1367_p9 = scmp.lt.s32.totalorder %s229_s18, %s229_s18 }
  0x1e   : > { %p1350_p0 = pneg %p1652_p2  ;;  %p1368_p10 = scmp.lt.s32.totalorder %s1359_s22, %s1359_s22 }
  0x20   : > { %p1362_p7 = pnand %p1360_p3, %p1350_p0  ;;  %p1369_p12 = por %p1368_p10, %p1367_p9 }
  0x22   : > { %p1363_p8 = pneg %p1362_p7 }
  0x24   : > { %p1370_p1 = pnand %p1369_p12, %p1363_p8 }
  0x26   : > { %1373 = shalt.err (!%p1370_p1)
}
  0x27   : > { %s1532_s23 = smov 64   ;;  %s1533_s24 = smov 4  }
  0x28   : > { %s1982_s2 = sld [smem:[#allocation17_spill]]  ;;  %s1385_s9 = scalar_lea.vmem %s242_s21, 1024 }
  0x29   : > { %p1386_p4 = scmp.ne.s32.totalorder %s242_s21, %s1385_s9  ;;  %p1393_p11 = scmp.lt.s32.totalorder %s242_s21, %s242_s21 }
  0x2a   : > { %p1394_p6 = scmp.lt.s32.totalorder %s1385_s9, %s1385_s9 }
  0x2b   : > { %p1388_p3 = pnand %p1386_p4, %p1350_p0 }
  0x2c   : > { %p1395_p9 = por %p1394_p6, %p1393_p11 }
  0x2d   : > { %p1389_p7 = pneg %p1388_p3 }
  0x2e   : > { %1279 = dma.hbm_to_vmem [thread:$0]  (!%p1652_p2), %s1982_s2, 1024, %s229_s18, [#allocation7], %s1532_s23, %s1532_s23, %s1533_s24  }
  0x2f   : > { %p1396_p12 = pnand %p1395_p9, %p1389_p7 }
  0x31   : > { %1399 = shalt.err (!%p1396_p12)
}
  0x32   : > { %s1983_s3 = sld [smem:[#allocation18_spill]]  ;;  %p1973_p8 = scmp.ge.s32.totalorder %s1528_s29, 2 }
  0x34   : > { %260 = sbr.rel (%p1973_p8) target bundleno = 121 (0x79), region = 36 }
  0x38   : > { %1282 = dma.hbm_to_vmem [thread:$0]  (!%p1652_p2), %s1983_s3, 1024, %s242_s21, [#allocation10], %s1532_s23, %s1532_s23, %s1533_s24  }
  0x39   : > { %263 = sbr.rel (!%p1623_p5) target bundleno = 89 (0x59), region = 40  ;;  %s264_s18 = sand.u32 (%p1623_p5), 1, %s1524_s28  }
  0x3a   : > { %s1127_s20 = sshll.u32 (%p1623_p5), %s1528_s29, 4  ;;  %s1126_s22 = sshll.u32 (%p1623_p5), %s264_s18, 7 }
  0x3b   : > { %s270_s25 = ssub.s32 (%p1623_p5), 25, %s1127_s20  ;;  %s1684_s23 = scalar_lea.sflag (%p1623_p5), [#allocation4], %s264_s18 }
  0x3c   : > { %p271_p4 = scmp.lt.s32.totalorder (%p1623_p5), %s270_s25, 16  ;;  %s268_s24 = scalar_lea.vmem (%p1623_p5), [#allocation3], %s1126_s22 }
  0x3e   : > { %s1997_s25 = smov (!%p271_p4, %s270_s25), 16 }
  0x3f   : > { %s1681_s19 = sshll.u32 %s1997_s25, 7 }
  0x40   : > { %s275_s21 = ssub.s32 2048, %s1681_s19 }
  0x41   : > { %276 = vsyncadd %s1684_s23, %s275_s21  ;;  %p1129_p6 = scmp.ne.s32.totalorder %s1681_s19, 0  ;;  %s1166_s30 = sshll.u32 %s1528_s29, 11 }
  0x42   : > { %s1692_s17 = scalar_lea.hbm %s1962_s0, %s1166_s30  ;;  %s281_s20 = sshll.u32 %s268_s24, 4  ;;  %s1694_s20 = int_to_ptr.vmem [resolvable:$true] %s281_s20 }
  0x43   : > { %s1400_s18 = scalar_lea.hbm %s1692_s17, %s1681_s19  ;;  %s1404_s21 = scalar_lea.hbm %s1962_s0, 3200 }
  0x44   : > { %p1401_p11 = scmp.ne.s32.totalorder %s1692_s17, %s1400_s18  ;;  %p1405_p10 = scmp.lt.s32.totalorder %s1692_s17, %s1962_s0 }
  0x45   : > { %p1406_p1 = scmp.lt.s32.totalorder %s1404_s21, %s1400_s18 }
  0x46   : > { %p1402_p2 = pnand %p1401_p11, %p1129_p6 }
  0x47   : > { %p1407_p3 = por %p1406_p1, %p1405_p10 }
  0x48   : > { %p1403_p0 = pneg %p1402_p2 }
  0x4a   : > { %p1408_p7 = pnand %p1407_p3, %p1403_p0 }
  0x4c   : > { %1411 = shalt.err (!%p1408_p7)
}
  0x4d   : > { %s1412_s24 = scalar_lea.vmem %s1694_s20, %s1681_s19  ;;  %s1534_s30 = smov [#allocation3]  }
  0x4e   : > { %p1413_p9 = scmp.ne.s32.totalorder %s1694_s20, %s1412_s24  ;;  %s1416_s9 = sshll.u32 %s1534_s30, 4  ;;  %s1417_s9 = int_to_ptr.vmem [resolvable:$false] %s1416_s9 }
  0x4f   : > { %s1418_s10 = scalar_lea.vmem %s1417_s9, 4096  ;;  %p1419_p11 = scmp.lt.s32.totalorder %s1694_s20, %s1417_s9 }
  0x50   : > { %p1414_p12 = pnand %p1413_p9, %p1129_p6  ;;  %p1420_p2 = scmp.lt.s32.totalorder %s1418_s10, %s1412_s24 }
  0x52   : > { %p1415_p4 = pneg %p1414_p12  ;;  %p1421_p8 = por %p1420_p2, %p1419_p11 }
  0x54   : > { %p1422_p10 = pnand %p1421_p8, %p1415_p4 }
  0x56   : > { %1425 = shalt.err (!%p1422_p10)
}
  0x57   : > { %s1535_s2 = smov 128   ;;  %s1536_s3 = smov 8  }
  0x58   : > { %287 = dma.hbm_to_vmem [thread:$0]  (%p1129_p6), %s1692_s17, %s1681_s19, %s1694_s20, %s1684_s23, %s1535_s2, %s1535_s2, %s1536_s3  }
  0x59 PF: > { %290 = sbr.rel (!%p1623_p5) target bundleno = 121 (0x79), region = 44  ;;  %s291_s18 = sand.u32 (%p1623_p5), 1, %s1528_s29  }
  0x5a   : > { %s293_s22 = sand.u32 (%p1623_p5), 1, %s1524_s28   ;;  %s1134_s21 = sshll.u32 (%p1623_p5), %s1528_s29, 4 }
  0x5b   : > { %s1133_s25 = sshll.u32 (%p1623_p5), %s293_s22, 7  ;;  %s297_s24 = ssub.s32 (%p1623_p5), 25, %s1134_s21 }
  0x5c   : > { %p298_p8 = scmp.lt.s32.totalorder (%p1623_p5), %s297_s24, 16  ;;  %s1728_s10 = scalar_lea.sflag (%p1623_p5), [#allocation7], %s291_s18 }
  0x5d   : > { %s295_s19 = scalar_lea.vmem (%p1623_p5), [#allocation6], %s1133_s25 }
  0x5e   : > { %s1999_s24 = smov (!%p298_p8, %s297_s24), 16 }
  0x5f   : > { %s1725_s30 = sshll.u32 %s1999_s24, 7 }
  0x60   : > { %s302_s9 = ssub.s32 2048, %s1725_s30 }
  0x61   : > { %303 = vsyncadd %s1728_s10, %s302_s9  ;;  %p1136_p5 = scmp.ne.s32.totalorder %s1725_s30, 0  ;;  %s1167_s12 = sshll.u32 %s1528_s29, 11 }
  0x62   : > { %s1736_s20 = scalar_lea.hbm %s1963_s1, %s1167_s12  ;;  %s308_s2 = sshll.u32 %s295_s19, 4  ;;  %s1738_s2 = int_to_ptr.vmem [resolvable:$true] %s308_s2 }
  0x63   : > { %s1426_s3 = scalar_lea.hbm %s1736_s20, %s1725_s30  ;;  %s1430_s25 = scalar_lea.hbm %s1963_s1, 3200 }
  0x64   : > { %p1427_p6 = scmp.ne.s32.totalorder %s1736_s20, %s1426_s3  ;;  %p1431_p3 = scmp.lt.s32.totalorder %s1736_s20, %s1963_s1 }
  0x65   : > { %p1432_p7 = scmp.lt.s32.totalorder %s1430_s25, %s1426_s3 }
  0x66   : > { %p1428_p0 = pnand %p1427_p6, %p1136_p5 }
  0x67   : > { %p1433_p9 = por %p1432_p7, %p1431_p3 }
  0x68   : > { %p1429_p1 = pneg %p1428_p0 }
  0x6a   : > { %p1434_p12 = pnand %p1433_p9, %p1429_p1 }
  0x6c   : > { %1437 = shalt.err (!%p1434_p12)
}
  0x6d   : > { %s1438_s9 = scalar_lea.vmem %s1738_s2, %s1725_s30  ;;  %s1537_s19 = smov [#allocation6]  }
  0x6e   : > { %p1439_p4 = scmp.ne.s32.totalorder %s1738_s2, %s1438_s9  ;;  %s1442_s12 = sshll.u32 %s1537_s19, 4  ;;  %s1443_s12 = int_to_ptr.vmem [resolvable:$false] %s1442_s12 }
  0x6f   : > { %s1444_s23 = scalar_lea.vmem %s1443_s12, 4096  ;;  %p1445_p10 = scmp.lt.s32.totalorder %s1738_s2, %s1443_s12 }
  0x70   : > { %p1440_p11 = pnand %p1439_p4, %p1136_p5  ;;  %p1446_p8 = scmp.lt.s32.totalorder %s1444_s23, %s1438_s9 }
  0x72   : > { %p1441_p2 = pneg %p1440_p11  ;;  %p1447_p6 = por %p1446_p8, %p1445_p10 }
  0x74   : > { %p1448_p0 = pnand %p1447_p6, %p1441_p2 }
  0x76   : > { %1451 = shalt.err (!%p1448_p0)
}
  0x77   : > { %s1538_s17 = smov 128   ;;  %s1539_s3 = smov 8  }
  0x78   : > { %314 = dma.hbm_to_vmem [thread:$0]  (%p1136_p5), %s1736_s20, %s1725_s30, %s1738_s2, %s1728_s10, %s1538_s17, %s1538_s17, %s1539_s3  }
  0x79 PF: > { %320 = sbr.rel (%p1644_p13) target bundleno = 562 (0x232), region = 48  ;;  %s1767_s18 = sand.u32 (!%p1644_p13), 1, %s1520_s27  }
  0x7a   : > { %s1141_s22 = sshll.u32 (!%p1644_p13), %s1767_s18, 7  ;;  %s323_s25 = scalar_lea.sflag (!%p1644_p13), [#allocation4], %s1767_s18 }
  0x7b   : > { %s1771_s21 = scalar_lea.vmem (!%p1644_p13), [#allocation3], %s1141_s22  ;;  %p1984_p1 = scmp.ne.s32.totalorder (!%p1644_p13), %s1977_s13, 0 }
  0x7e   : > { %1495 = dma.done.wait (%p1984_p1), %s323_s25, 2048  }
  0x7f   : > { %1497 = vsyncadd (%p1984_p1), %s323_s25, 4294965248  ;;  %s331_s30 = sand.u32 1, %s1605_s6   ;;  %s1778_s10 = scalar_lea.vmem [#allocation6], %s1141_s22 }
  0x80   : > { %s332_s16 = scalar_lea.sflag [#allocation7], %s331_s30 }
  0x81   : > { %1499 = dma.done.wait (%p1984_p1), %s332_s16, 2048  }
  0x82   : > { %1501 = vsyncadd (%p1984_p1), %s332_s16, 4294965248  ;;  %p1985_p13 = scmp.eq.s32.totalorder %s1605_s6, 0 }
  0x84   : > { %1503 = dma.done.wait (%p1985_p13), [#allocation7], 1024   ;;  %p1986_p5 = pmov %p1985_p13 }
  0x86   : > { %1505 = vsyncadd (%p1986_p5), [#allocation7], 4294966272  ;;  %p1987_p3 = pmov %p1986_p5 }
  0x88   : > { %1507 = dma.done.wait (%p1987_p3), [#allocation10], 1024   ;;  %p1988_p7 = pmov %p1987_p3 }
  0x89   : > { %v1332_v0 = vld [vmem:[#allocation9 + $0x38] sm:$0xff]   ;;  %v1334_v2 = vld [vmem:[#allocation9 + $0x30] sm:$0xff]   ;;  %v1336_v4 = vld [vmem:[#allocation9 + $0x28] sm:$0xff]   ;;  %s853_s9 = sld [smem:[#allocation2]]  ;;  %vm898_vm0 = vcmask 130112   ;;  %vm905_vm1 = vcmask 195712  }
  0x8a   : > { %1509 = vsyncadd (%p1988_p7), [#allocation10], 4294966272  ;;  %v1333_v1 = vld [vmem:[#allocation8 + $0x38] sm:$0xff]   ;;  %1200 = vmatprep.subr.bf16.mxu0 %v1332_v0  ;;  %v1335_v3 = vld [vmem:[#allocation8 + $0x30] sm:$0xff]   ;;  %vm912_vm2 = vcmask 261312   ;;  %vm919_vm3 = vcmask 326912  }
  0x8b   : > { %1232 = vmatprep.subr.bf16.mxu1 %v1333_v1  ;;  %1201 = vmatpush3.bf16.msra.mxu0 %v1332_v0  ;;  %v1337_v5 = vld [vmem:[#allocation8 + $0x28] sm:$0xff]   ;;  %v1338_v6 = vld [vmem:[#allocation9 + $0x20] sm:$0xff]   ;;  %v1340_v8 = vld [vmem:[#allocation9 + $0x18] sm:$0xff]   ;;  %vm926_vm4 = vcmask 392512   ;;  %vm933_vm5 = vcmask 458112   ;;  %vm940_vm6 = vcmask 523712  }
  0x8c   : > { %1233 = vmatpush3.bf16.msra.mxu1 %v1333_v1  ;;  %1202 = vmatprep.subr.bf16.mxu0 %v1334_v2  ;;  %v1339_v7 = vld [vmem:[#allocation8 + $0x20] sm:$0xff]   ;;  %v1341_v9 = vld [vmem:[#allocation8 + $0x18] sm:$0xff]   ;;  %v1342_v10 = vld [vmem:[#allocation9 + $0x10] sm:$0xff]   ;;  %vm947_vm7 = vcmask 589312   ;;  %vm954_vm8 = vcmask 654912   ;;  %vm961_vm9 = vcmask 720512  }
  0x8d   : > { %1234 = vmatprep.subr.bf16.mxu1 %v1335_v3  ;;  %v413_v11 = vld [vmem:[%s1778_s10] sm:$0xff]  ;;  %v414_v12 = vld [vmem:[%s1778_s10 + $0x8] sm:$0xff]  ;;  %v1343_v14 = vld [vmem:[#allocation8 + $0x10] sm:$0xff]   ;;  %vm968_vm10 = vcmask 786112   ;;  %vm975_vm11 = vcmask 851712   ;;  %vm982_vm12 = vcmask 917312  }
  0x8e   : > { %v389_v13 = vld [vmem:[%s1771_s21] sm:$0xff]  ;;  %v429_v15 = vpack.c.bf16 %v414_v12, %v413_v11  ;;  %v390_v16 = vld [vmem:[%s1771_s21 + $0x8] sm:$0xff]  ;;  %v415_v22 = vld [vmem:[%s1778_s10 + $0x10] sm:$0xff]  ;;  %vm989_vm13 = vcmask 982912   ;;  %s1163_s19 = sshll.u32 %s1605_s6, 4  ;;  %s377_s12 = scalar_lea.vmem [#allocation11], %s1767_s18 }
  0x8f   : > { %1203 = vmatpush3.bf16.msra.mxu0 %v1334_v2  ;;  %v405_v17 = vpack.c.bf16 %v390_v16, %v389_v13  ;;  %v1344_v18 = vld [vmem:[#allocation9 + $0x8] sm:$0xff]   ;;  %v1346_v20 = vld [vmem:[#allocation9] sm:$0xff]   ;;  %v416_v23 = vld [vmem:[%s1778_s10 + $0x18] sm:$0xff]  ;;  %s1013_s23 = sshll.u32 %s377_s12, 4  ;;  %vm996_vm14 = vcmask 1048512   ;;  %s1925_s22 = scalar_lea.hbm %s1969_s7, %s1163_s19  ;;  %s1014_s23 = int_to_ptr.vmem [resolvable:$true] %s1013_s23 }
  0x90   : > { %1235 = vmatpush3.bf16.msra.mxu1 %v1335_v3  ;;  %1204 = vmatprep.subr.bf16.mxu0 %v1336_v4  ;;  %v1345_v19 = vld [vmem:[#allocation8 + $0x8] sm:$0xff]   ;;  %v1347_v21 = vld [vmem:[#allocation8] sm:$0xff]   ;;  %v391_v24 = vld [vmem:[%s1771_s21 + $0x10] sm:$0xff]  ;;  %v430_v30 = vpack.c.bf16 %v416_v23, %v415_v22  ;;  %s1001_s25 = scalar_lea.sflag [#allocation5], %s1767_s18  ;;  %p1989_p12 = scmp.ne.s32.totalorder %s1978_s14, 0 }
  0x91   : > { %1236 = vmatprep.subr.bf16.mxu1 %v1337_v5  ;;  %1216 = vmatprep.mubr.bf16.mxu0 %v429_v15  ;;  %v392_v25 = vld [vmem:[%s1771_s21 + $0x18] sm:$0xff]  ;;  %v417_v26 = vld [vmem:[%s1778_s10 + $0x20] sm:$0xff]  ;;  %v418_v27 = vld [vmem:[%s1778_s10 + $0x28] sm:$0xff]  ;;  %s1540_s6 = smov [#allocation11]  }
  0x92   : > { %1248 = vmatprep.mubr.bf16.mxu1 %v405_v17  ;;  %v393_v28 = vld [vmem:[%s1771_s21 + $0x20] sm:$0xff]  ;;  %v394_v29 = vld [vmem:[%s1771_s21 + $0x28] sm:$0xff]  ;;  %v406_v31 = vpack.c.bf16 %v392_v25, %v391_v24  ;;  %v431_v32 = vpack.c.bf16 %v418_v27, %v417_v26  ;;  %v419_v34 = vld [vmem:[%s1778_s10 + $0x30] sm:$0xff]  ;;  %s1456_s30 = sshll.u32 %s1540_s6, 4  ;;  %s1457_s30 = int_to_ptr.vmem [resolvable:$false] %s1456_s30 }
  0x93   : > { %1205 = vmatpush3.bf16.msra.mxu0 %v1336_v4  ;;  %v407_v33 = vpack.c.bf16 %v394_v29, %v393_v28  ;;  %v420_v35 = vld [vmem:[%s1778_s10 + $0x38] sm:$0xff]  ;;  %v395_v36 = vld [vmem:[%s1771_s21 + $0x30] sm:$0xff]  ;;  %v421_v38 = vld [vmem:[%s1778_s10 + $0x40] sm:$0xff]  ;;  %s1458_s16 = scalar_lea.vmem %s1457_s30, 32  ;;  %p1459_p2 = scmp.lt.s32.totalorder %s1014_s23, %s1457_s30 }
  0x94   : > { %1237 = vmatpush3.bf16.msra.mxu1 %v1337_v5  ;;  %1206 = vmatprep.subr.bf16.mxu0 %v1338_v6  ;;  %v396_v37 = vld [vmem:[%s1771_s21 + $0x38] sm:$0xff]  ;;  %v422_v39 = vld [vmem:[%s1778_s10 + $0x48] sm:$0xff]  ;;  %v397_v40 = vld [vmem:[%s1771_s21 + $0x40] sm:$0xff]  ;;  %v432_v42 = vpack.c.bf16 %v420_v35, %v419_v34 }
  0x95   : > { %1238 = vmatprep.subr.bf16.mxu1 %v1339_v7  ;;  %v398_v41 = vld [vmem:[%s1771_s21 + $0x48] sm:$0xff]  ;;  %v408_v43 = vpack.c.bf16 %v396_v37, %v395_v36  ;;  %v433_v44 = vpack.c.bf16 %v422_v39, %v421_v38  ;;  %v423_v46 = vld [vmem:[%s1778_s10 + $0x50] sm:$0xff]  ;;  %v424_v47 = vld [vmem:[%s1778_s10 + $0x58] sm:$0xff] }
  0x96   : > { %v409_v45 = vpack.c.bf16 %v398_v41, %v397_v40  ;;  %v399_v48 = vld [vmem:[%s1771_s21 + $0x50] sm:$0xff]  ;;  %v400_v49 = vld [vmem:[%s1771_s21 + $0x58] sm:$0xff]  ;;  %v425_v50 = vld [vmem:[%s1778_s10 + $0x60] sm:$0xff]  ;;  %v434_v54 = vpack.c.bf16 %v424_v47, %v423_v46 }
  0x97   : > { %1207 = vmatpush3.bf16.msra.mxu0 %v1338_v6  ;;  %v426_v51 = vld [vmem:[%s1778_s10 + $0x68] sm:$0xff]  ;;  %v401_v52 = vld [vmem:[%s1771_s21 + $0x60] sm:$0xff]  ;;  %v410_v55 = vpack.c.bf16 %v400_v49, %v399_v48  ;;  %v427_v58 = vld [vmem:[%s1778_s10 + $0x70] sm:$0xff] }
  0x98   : > { %1239 = vmatpush3.bf16.msra.mxu1 %v1339_v7  ;;  %1208 = vmatprep.subr.bf16.mxu0 %v1340_v8  ;;  %v402_v53 = vld [vmem:[%s1771_s21 + $0x68] sm:$0xff]  ;;  %v435_v56 = vpack.c.bf16 %v426_v51, %v425_v50  ;;  %v428_v59 = vld [vmem:[%s1778_s10 + $0x78] sm:$0xff]  ;;  %v403_v60 = vld [vmem:[%s1771_s21 + $0x70] sm:$0xff] }
  0x99   : > { %1240 = vmatprep.subr.bf16.mxu1 %v1341_v9  ;;  %v411_v57 = vpack.c.bf16 %v402_v53, %v401_v52  ;;  %v404_v61 = vld [vmem:[%s1771_s21 + $0x78] sm:$0xff]  ;;  %v436_v62 = vpack.c.bf16 %v428_v59, %v427_v58  ;;  %v1827_v2 = vld [vmem:[%s1966_s4] ss:$0 sm:$0xff]  ;;  %s1452_s21 = scalar_lea.vmem %s1014_s23, 16 }
  0x9a   : > { %v412_v63 = vpack.c.bf16 %v404_v61, %v403_v60  ;;  %p1453_p9 = scmp.ne.s32.totalorder %s1014_s23, %s1452_s21  ;;  %p1460_p10 = scmp.lt.s32.totalorder %s1458_s16, %s1452_s21 }
  0x9b   : > { %1209 = vmatpush3.bf16.msra.mxu0 %v1340_v8 }
  0x9c   : > { %1241 = vmatpush3.bf16.msra.mxu1 %v1341_v9  ;;  %1210 = vmatprep.subr.bf16.mxu0 %v1342_v10  ;;  %p1454_p4 = pnand %p1453_p9, %p1989_p12  ;;  %p1461_p8 = por %p1460_p10, %p1459_p2 }
  0x9d   : > { %1242 = vmatprep.subr.bf16.mxu1 %v1343_v14 }
  0x9e   : > { %p1455_p11 = pneg %p1454_p4 }
  0x9f   : > { %1211 = vmatpush3.bf16.msra.mxu0 %v1342_v10  ;;  %v1833_v10 = vld [vmem:[%s1967_s5] ss:$0 sm:$0xff] }
  0xa0   : > { %1243 = vmatpush3.bf16.msra.mxu1 %v1343_v14  ;;  %1212 = vmatprep.subr.bf16.mxu0 %v1344_v18  ;;  %p1462_p6 = pnand %p1461_p8, %p1455_p11 }
  0xa1   : > { %1244 = vmatprep.subr.bf16.mxu1 %v1345_v19 }
  0xa3   : > { %1213 = vmatpush3.bf16.msra.mxu0 %v1344_v18 }
  0xa4   : > { %1245 = vmatpush3.bf16.msra.mxu1 %v1345_v19  ;;  %1214 = vmatprep.subr.bf16.mxu0 %v1346_v20 }
  0xa5   : > { %1246 = vmatprep.subr.bf16.mxu1 %v1347_v21 }
  0xa7   : > { %1215 = vmatpush3.bf16.msra.mxu0 %v1346_v20 }
  0xa8   : > { %1247 = vmatpush3.bf16.msra.mxu1 %v1347_v21 }
  0xaa   : > { %1217 = vmatmul.mubr.bf16.vlgmr.msra.gmra.mxu0 %v430_v30 }
  0xab   : > { %1249 = vmatmul.mubr.bf16.vlgmr.msra.gmra.mxu1 %v406_v31  ;;  %1220 = vmatprep.mubr.bf16.mxu0 %v431_v32 }
  0xac   : > { %1252 = vmatprep.mubr.bf16.mxu1 %v407_v33 }
  0xb2   : > { %1221 = vmatmul.mubr.bf16.gmra.mxu0 %v432_v42 }
  0xb3   : > { %1253 = vmatmul.mubr.bf16.gmra.mxu1 %v408_v43  ;;  %1224 = vmatprep.mubr.bf16.mxu0 %v433_v44 }
  0xb4   : > { %1256 = vmatprep.mubr.bf16.mxu1 %v409_v45 }
  0xba   : > { %1225 = vmatmul.mubr.bf16.gmra.mxu0 %v434_v54 }
  0xbb   : > { %1257 = vmatmul.mubr.bf16.gmra.mxu1 %v410_v55  ;;  %1228 = vmatprep.mubr.bf16.mxu0 %v435_v56 }
  0xbc   : > { %1260 = vmatprep.mubr.bf16.mxu1 %v411_v57 }
  0xc2   : > { %1229 = vmatmul.mubr.bf16.gmra.mxu0 %v436_v62 }
  0xc3   : > { %1261 = vmatmul.mubr.bf16.gmra.mxu1 %v412_v63 }
 0x16a   : > { %v1218_v0 = vpop.f32.mrf.mxu0 }
 0x16b   : > { %v1250_v1 = vpop.f32.mrf.mxu1 }
 0x16c   : > { %v705_v3 = vadd.f32 %v1250_v1, %v1218_v0  ;;  %v551_v4 = vpop.f32.mrf.mxu0 }
 0x16d   : > { %v696_v5 = vpop.f32.mrf.mxu1 }
 0x16e   : > { %v697_v6 = vadd.f32 %v696_v5, %v551_v4  ;;  %v1219_v7 = vpop.f32.mrf.mxu0  ;;  %v768_v8 = vadd.f32 %v1827_v2, %v705_v3 }
 0x16f   : > { %v1251_v9 = vpop.f32.mrf.mxu1 }
 0x170   : > { %v708_v11 = vadd.f32 %v1251_v9, %v1219_v7  ;;  %v554_v12 = vpop.f32.mrf.mxu0  ;;  %v784_v13 = vmax.f32 %v768_v8, 0.0  ;;  %v766_v14 = vadd.f32 %v1827_v2, %v697_v6 }
 0x171   : > { %v699_v15 = vpop.f32.mrf.mxu1 }
 0x172   : > { %v769_v16 = vadd.f32 %v1827_v2, %v708_v11  ;;  %v700_v17 = vadd.f32 %v699_v15, %v554_v12  ;;  %v1222_v18 = vpop.f32.mrf.mxu0  ;;  %v807_v19 = vmul.f32 %v1833_v10, %v784_v13  ;;  %v782_v20 = vmax.f32 %v766_v14, 0.0 }
 0x173   : > { %v1254_v21 = vpop.f32.mrf.mxu1 }
 0x174   : > { %v785_v22 = vmax.f32 %v769_v16, 0.0  ;;  %v767_v23 = vadd.f32 %v1827_v2, %v700_v17  ;;  %v721_v24 = vadd.f32 %v1254_v21, %v1222_v18  ;;  %825 = vadd.xlane.f32.xlu1 %v807_v19  ;;  %v567_v25 = vpop.f32.mrf.mxu0  ;;  %v805_v26 = vmul.f32 %v1833_v10, %v782_v20 }
 0x175   : > { %v712_v27 = vpop.f32.mrf.mxu1 }
 0x176   : > { %v783_v28 = vmax.f32 %v767_v23, 0.0  ;;  %v772_v29 = vadd.f32 %v1827_v2, %v721_v24  ;;  %v713_v30 = vadd.f32 %v712_v27, %v567_v25  ;;  %821 = vadd.xlane.f32.xlu0 %v805_v26  ;;  %v1223_v31 = vpop.f32.mrf.mxu0  ;;  %v808_v32 = vmul.f32 %v1833_v10, %v785_v22 }
 0x177   : > { %v1255_v33 = vpop.f32.mrf.mxu1 }
 0x178   : > { %v788_v34 = vmax.f32 %v772_v29, 0.0  ;;  %v770_v35 = vadd.f32 %v1827_v2, %v713_v30  ;;  %v724_v36 = vadd.f32 %v1255_v33, %v1223_v31  ;;  %827 = vadd.xlane.f32.xlu1 %v808_v32  ;;  %v570_v37 = vpop.f32.mrf.mxu0  ;;  %v806_v38 = vmul.f32 %v1833_v10, %v783_v28 }
 0x179   : > { %v715_v39 = vpop.f32.mrf.mxu1 }
 0x17a   : > { %v773_v40 = vadd.f32 %v1827_v2, %v724_v36  ;;  %v716_v41 = vadd.f32 %v715_v39, %v570_v37  ;;  %823 = vadd.xlane.f32.xlu0 %v806_v38  ;;  %v1226_v42 = vpop.f32.mrf.mxu0  ;;  %v786_v43 = vmax.f32 %v770_v35, 0.0  ;;  %v811_v49 = vmul.f32 %v1833_v10, %v788_v34 }
 0x17b   : > { %v1258_v44 = vpop.f32.mrf.mxu1  ;;  %v887_v36 = vlaneseq }
 0x17c   : > { %v789_v45 = vmax.f32 %v773_v40, 0.0  ;;  %v771_v46 = vadd.f32 %v1827_v2, %v716_v41  ;;  %v737_v47 = vadd.f32 %v1258_v44, %v1226_v42  ;;  %v583_v48 = vpop.f32.mrf.mxu0  ;;  %v809_v61 = vmul.f32 %v1833_v10, %v786_v43 }
 0x17d   : > { %v728_v50 = vpop.f32.mrf.mxu1  ;;  %v1866_v37 = vand.u32 127, %v887_v36  ;;  %v1869_v40 = vshrl.u32 %v887_v36, 7  ;;  %v1872_v42 = vstv %s853_s9 }
 0x17e   : > { %v787_v51 = vmax.f32 %v771_v46, 0.0  ;;  %v776_v52 = vadd.f32 %v1827_v2, %v737_v47  ;;  %v729_v53 = vadd.f32 %v728_v50, %v583_v48  ;;  %833 = vadd.xlane.f32.xlu0 %v811_v49  ;;  %v1227_v54 = vpop.f32.mrf.mxu0  ;;  %v812_v55 = vmul.f32 %v1833_v10, %v789_v45 }
 0x17f   : > { %v1259_v56 = vpop.f32.mrf.mxu1  ;;  %v900_v41 = vadd.s32 4294967280, %v1866_v37  ;;  %v907_v46 = vadd.s32 4294967272, %v1866_v37 }
 0x180   : > { %v792_v57 = vmax.f32 %v776_v52, 0.0  ;;  %v774_v58 = vadd.f32 %v1827_v2, %v729_v53  ;;  %v740_v59 = vadd.f32 %v1259_v56, %v1227_v54  ;;  %835 = vadd.xlane.f32.xlu1 %v812_v55  ;;  %v586_v60 = vpop.f32.mrf.mxu0  ;;  %v810_v3 = vmul.f32 %v1833_v10, %v787_v51 }
 0x181   : > { %v731_v62 = vpop.f32.mrf.mxu1  ;;  %v903_v48 = vsub.s32 %v900_v41, %v1869_v40  ;;  %v914_v52 = vadd.s32 4294967264, %v1866_v37  ;;  %v910_v55 = vsub.s32 %v907_v46, %v1869_v40  ;;  %v921_v56 = vadd.s32 4294967256, %v1866_v37 }
 0x182   : > { %v777_v63 = vadd.f32 %v1827_v2, %v740_v59  ;;  %v732_v0 = vadd.f32 %v731_v62, %v586_v60  ;;  %829 = vadd.xlane.f32.xlu0 %v809_v61  ;;  %v1230_v1 = vpop.f32.mrf.mxu0  ;;  %v790_v4 = vmax.f32 %v774_v58, 0.0  ;;  %v815_v11 = vmul.f32 %v1833_v10, %v792_v57 }
 0x183   : > { %v1262_v5 = vpop.f32.mrf.mxu1  ;;  %v928_v59 = vadd.s32 4294967248, %v1866_v37  ;;  %v917_v62 = vsub.s32 %v914_v52, %v1869_v40  ;;  %v991_v52 = vadd.s32 4294967176, %v1866_v37 }
 0x184   : > { %v793_v6 = vmax.f32 %v777_v63, 0.0  ;;  %v775_v7 = vadd.f32 %v1827_v2, %v732_v0  ;;  %v753_v8 = vadd.f32 %v1262_v5, %v1230_v1  ;;  %831 = vadd.xlane.f32.xlu1 %v810_v3  ;;  %v599_v9 = vpop.f32.mrf.mxu0  ;;  %v813_v22 = vmul.f32 %v1833_v10, %v790_v4 }
 0x185   : > { %v744_v12 = vpop.f32.mrf.mxu1  ;;  %v924_v3 = vsub.s32 %v921_v56, %v1869_v40  ;;  %v931_v5 = vsub.s32 %v928_v59, %v1869_v40 }
 0x186   : > { %v791_v13 = vmax.f32 %v775_v7, 0.0  ;;  %v745_v14 = vadd.f32 %v744_v12, %v599_v9  ;;  %841 = vadd.xlane.f32.xlu0 %v815_v11  ;;  %v1231_v15 = vpop.f32.mrf.mxu0  ;;  %v816_v16 = vmul.f32 %v1833_v10, %v793_v6  ;;  %v780_v18 = vadd.f32 %v1827_v2, %v753_v8 }
 0x187   : > { %v1263_v17 = vpop.f32.mrf.mxu1  ;;  %v935_v6 = vadd.s32 4294967240, %v1866_v37  ;;  %v942_v12 = vadd.s32 4294967232, %v1866_v37 }
 0x188   : > { %v778_v19 = vadd.f32 %v1827_v2, %v745_v14  ;;  %v756_v20 = vadd.f32 %v1263_v17, %v1231_v15  ;;  %843 = vadd.xlane.f32.xlu1 %v816_v16  ;;  %v602_v21 = vpop.f32.mrf.mxu0  ;;  %v814_v26 = vmul.f32 %v1833_v10, %v791_v13  ;;  %v796_v27 = vmax.f32 %v780_v18, 0.0 }
 0x189   : > { %v747_v23 = vpop.f32.mrf.mxu1  ;;  %v956_v14 = vadd.s32 4294967216, %v1866_v37  ;;  %v949_v18 = vadd.s32 4294967224, %v1866_v37 }
 0x18a   : > { %v794_v24 = vmax.f32 %v778_v19, 0.0  ;;  %v748_v25 = vadd.f32 %v747_v23, %v602_v21  ;;  %837 = vadd.xlane.f32.xlu0 %v813_v22  ;;  %v781_v28 = vadd.f32 %v1827_v2, %v756_v20  ;;  %v819_v34 = vmul.f32 %v1833_v10, %v796_v27 }
 0x18b   : > { %v938_v19 = vsub.s32 %v935_v6, %v1869_v40  ;;  %v963_v21 = vadd.s32 4294967208, %v1866_v37 }
 0x18c   : > { %v779_v29 = vadd.f32 %v1827_v2, %v748_v25  ;;  %839 = vadd.xlane.f32.xlu1 %v814_v26  ;;  %v817_v30 = vmul.f32 %v1833_v10, %v794_v24  ;;  %v797_v32 = vmax.f32 %v781_v28, 0.0  ;;  %v893_v2 = vadd.s32 4294967288, %v1866_v37 }
 0x18d   : > { %v945_v25 = vsub.s32 %v942_v12, %v1869_v40  ;;  %v959_v26 = vsub.s32 %v956_v14, %v1869_v40  ;;  %v970_v28 = vadd.s32 4294967200, %v1866_v37 }
 0x18e   : > { %v795_v31 = vmax.f32 %v779_v29, 0.0  ;;  %845 = vadd.xlane.f32.xlu0 %v817_v30  ;;  %v820_v35 = vmul.f32 %v1833_v10, %v797_v32  ;;  %v896_v43 = vsub.s32 %v893_v2, %v1869_v40 }
 0x190   : > { %v818_v33 = vmul.f32 %v1833_v10, %v795_v31  ;;  %v891_v10 = vsub.s32 %v1866_v37, %v1869_v40  ;;  %v952_v31 = vsub.s32 %v949_v18, %v1869_v40 }
 0x192   : > { %847 = vadd.xlane.f32.xlu1 %v818_v33  ;;  %849 = vadd.xlane.f32.xlu0 %v819_v34  ;;  %v966_v34 = vsub.s32 %v963_v21, %v1869_v40 }
 0x196   : > { %851 = vadd.xlane.f32.xlu1 %v820_v35 }
 0x1fd   : > { %v826_v38 = vpop.xlane.xlu1 %825 }
 0x1fe   : > { %v857_v50 = vadd.f32 %v1872_v42, %v826_v38 }
 0x1ff   : > { %v822_v39 = vpop.xlane.xlu0 %821 }
 0x200   : > { %v855_v44 = vadd.f32 %v1872_v42, %v822_v39  ;;  %v904_v61 = vrot.slane %v857_v50, %v903_v48  ;;  %v977_v39 = vadd.s32 4294967192, %v1866_v37 }
 0x201   : > { %v828_v49 = vpop.xlane.xlu1 %827 }
 0x202   : > { %v892_v53 = vrot.slane %v855_v44, %v891_v10  ;;  %v858_v57 = vadd.f32 %v1872_v42, %v828_v49  ;;  %v984_v44 = vadd.s32 4294967184, %v1866_v37 }
 0x203   : > { %v824_v45 = vpop.xlane.xlu0 %823 }
 0x204   : > { %v856_v47 = vadd.f32 %v1872_v42, %v824_v45  ;;  %v911_v4 = vrot.slane %v858_v57, %v910_v55  ;;  %v987_v56 = vsub.s32 %v984_v44, %v1869_v40 }
 0x206   : > { %v897_v51 = vrot.slane %v856_v47, %v896_v43  ;;  %v973_v43 = vsub.s32 %v970_v28, %v1869_v40 }
 0x207   : > { %v834_v54 = vpop.xlane.xlu0 %833 }
 0x208   : > { %v899_v58 = vsel %vm898_vm0, %v897_v51, %v892_v53  ;;  %v861_v8 = vadd.f32 %v1872_v42, %v834_v54  ;;  %v980_v51 = vsub.s32 %v977_v39, %v1869_v40 }
 0x209   : > { %v836_v60 = vpop.xlane.xlu1 %835  ;;  %v906_v0 = vsel %vm905_vm1, %v904_v61, %v899_v58 }
 0x20a   : > { %v913_v13 = vsel %vm912_vm2, %v911_v4, %v906_v0  ;;  %v862_v20 = vadd.f32 %v1872_v42, %v836_v60  ;;  %v932_v23 = vrot.slane %v861_v8, %v931_v5 }
 0x20b   : > { %v830_v63 = vpop.xlane.xlu0 %829 }
 0x20c   : > { %v859_v1 = vadd.f32 %v1872_v42, %v830_v63  ;;  %v939_v32 = vrot.slane %v862_v20, %v938_v19 }
 0x20d   : > { %v832_v7 = vpop.xlane.xlu1 %831 }
 0x20e   : > { %v918_v9 = vrot.slane %v859_v1, %v917_v62  ;;  %v860_v11 = vadd.f32 %v1872_v42, %v832_v7  ;;  %v994_v62 = vsub.s32 %v991_v52, %v1869_v40 }
 0x20f   : > { %v842_v15 = vpop.xlane.xlu0 %841 }
 0x210   : > { %v920_v16 = vsel %vm919_vm3, %v918_v9, %v913_v13  ;;  %v925_v17 = vrot.slane %v860_v11, %v924_v3  ;;  %v865_v33 = vadd.f32 %v1872_v42, %v842_v15 }
 0x211   : > { %v844_v22 = vpop.xlane.xlu1 %843 }
 0x212   : > { %v927_v24 = vsel %vm926_vm4, %v925_v17, %v920_v16  ;;  %v866_v36 = vadd.f32 %v1872_v42, %v844_v22  ;;  %v960_v48 = vrot.slane %v865_v33, %v959_v26 }
 0x213   : > { %v838_v27 = vpop.xlane.xlu0 %837  ;;  %v934_v29 = vsel %vm933_vm5, %v932_v23, %v927_v24 }
 0x214   : > { %v863_v30 = vadd.f32 %v1872_v42, %v838_v27  ;;  %v941_v41 = vsel %vm940_vm6, %v939_v32, %v934_v29  ;;  %v967_v49 = vrot.slane %v866_v36, %v966_v34 }
 0x215   : > { %v840_v35 = vpop.xlane.xlu1 %839 }
 0x216   : > { %v946_v2 = vrot.slane %v863_v30, %v945_v25  ;;  %v864_v38 = vadd.f32 %v1872_v42, %v840_v35 }
 0x217   : > { %v846_v10 = vpop.xlane.xlu0 %845 }
 0x218   : > { %v948_v45 = vsel %vm947_vm7, %v946_v2, %v941_v41  ;;  %v953_v46 = vrot.slane %v864_v38, %v952_v31  ;;  %v867_v47 = vadd.f32 %v1872_v42, %v846_v10 }
 0x21a   : > { %v955_v50 = vsel %vm954_vm8, %v953_v46, %v948_v45  ;;  %v974_v54 = vrot.slane %v867_v47, %v973_v43 }
 0x21b   : > { %v962_v53 = vsel %vm961_vm9, %v960_v48, %v955_v50  ;;  %v848_v55 = vpop.xlane.xlu1 %847  ;;  %v850_v57 = vpop.xlane.xlu0 %849 }
 0x21c   : > { %v969_v58 = vsel %vm968_vm10, %v967_v49, %v962_v53  ;;  %v868_v59 = vadd.f32 %v1872_v42, %v848_v55  ;;  %v869_v60 = vadd.f32 %v1872_v42, %v850_v57 }
 0x21d   : > { %v976_v63 = vsel %vm975_vm11, %v974_v54, %v969_v58 }
 0x21e   : > { %v981_v61 = vrot.slane %v868_v59, %v980_v51  ;;  %v988_v37 = vrot.slane %v869_v60, %v987_v56 }
 0x21f   : > { %v852_v0 = vpop.xlane.xlu1 %851 }
 0x220   : > { %v983_v1 = vsel %vm982_vm12, %v981_v61, %v976_v63  ;;  %v870_v3 = vadd.f32 %v1872_v42, %v852_v0 }
 0x221   : > { %v990_v5 = vsel %vm989_vm13, %v988_v37, %v983_v1 }
 0x222   : > { %v995_v4 = vrot.slane %v870_v3, %v994_v62 }
 0x224   : > { %v997_v40 = vsel %vm996_vm14, %v995_v4, %v990_v5 }
 0x225   : > { %999 = vst [vmem:[%s377_s12] sm:$0x1] %v997_v40 }
 0x226   : > { %1465 = shalt.err (!%p1462_p6)
}
 0x227   : > { %s1466_s10 = scalar_lea.hbm %s1925_s22, 16  ;;  %s1470_s20 = scalar_lea.hbm %s1969_s7, 32 }
 0x228   : > { %p1467_p0 = scmp.ne.s32.totalorder %s1925_s22, %s1466_s10  ;;  %p1471_p5 = scmp.lt.s32.totalorder %s1925_s22, %s1969_s7 }
 0x229   : > { %p1472_p3 = scmp.lt.s32.totalorder %s1470_s20, %s1466_s10 }
 0x22a   : > { %p1468_p1 = pnand %p1467_p0, %p1989_p12 }
 0x22b   : > { %p1473_p7 = por %p1472_p3, %p1471_p5 }
 0x22c   : > { %p1469_p13 = pneg %p1468_p1 }
 0x22e   : > { %p1474_p9 = pnand %p1473_p7, %p1469_p13 }
 0x230   : > { %1477 = shalt.err (!%p1474_p9)
}
 0x231   : > { %1274 = dma.vmem_to_hbm [thread:$0]  (%p1989_p12), %s1014_s23, 16, %s1925_s22, %s1001_s25  }
 0x232 PF: > { %s1025_s9 = sand.u32 1, %s1516_s26   ;;  %p1990_p4 = scmp.ne.s32.totalorder %s1979_s15, 0 }
 0x233   : > { %p1991_p11 = scmp.ge.s32.totalorder %s1528_s29, 2  ;;  %s1026_s19 = scalar_lea.sflag [#allocation5], %s1025_s9 }
 0x235   : > { %p1284_p2 = pnand %p1991_p11, %p1990_p4 }
 0x237   : > { %p1285_p10 = pneg %p1284_p2 }
 0x239   : > { %1511 = dma.done.wait (%p1285_p10), %s1026_s19, 16  }
 0x23a   : > { %1513 = vsyncadd (%p1285_p10), %s1026_s19, 4294967280  ;;  %p25_p8 = scmp.ge.s32.totalorder %s1609_s8, 4   ;;  %s1992_s26 = smov %s1520_s27 }
 0x23b   : > { %s1993_s27 = smov %s1524_s28  ;;  %s1994_s28 = smov %s1621_s11 }
 0x23c   : > { %s1995_s29 = smov %s1609_s8  ;;  %27 = sbr.rel (!%p25_p8) target bundleno = 12 (0xc), region = 114 }
 0x241   :  { %1030 = vsyncpa [#allocation4], 1 }
 0x242   :  { %1032 = vsyncpa [#allocation4 + $0x1], 1 }
 0x243   :  { %1033 = vsyncpa [#allocation7], 1 }
 0x244   :  { %1035 = vsyncpa [#allocation7 + $0x1], 1 }
 0x245   :  { %1036 = vsyncpa [#allocation10], 1 }
 0x246   :  { %1037 = vsyncpa [#allocation5], 1 }
 0x247   :  { %1039 = vsyncpa [#allocation5 + $0x1], 1 }

</bundles_post_ra>
